<compile_context>
chip_gen: v7x
topology: tpu7x:2x2x1
jax: 0.10.0
libtpu: 0.0.40
codegen_flags: <defaults>
</compile_context>

<pallas_src>
import functools

import jax
import jax.numpy as jnp
from jax.experimental import pallas as pl
from jax.experimental.pallas import tpu as pltpu


_VMEM_BUDGET_BYTES = 24 * 1024 * 1024   # target working set (fits every TPU gen)
_VMEM_LIMIT_BYTES = 32 * 1024 * 1024    # scoped VMEM limit passed to Mosaic


def _mlp_kernel(x_ref, w1_ref, b1_ref, w2_ref, b2_ref, w3_ref, b3_ref, o_ref):
    """Fused 3-layer MLP (ReLU, ReLU, identity) on one lane-dense row tile."""
    x = x_ref[...]
    h = jnp.dot(x, w1_ref[...], preferred_element_type=jnp.float32) + b1_ref[...]
    h = jnp.maximum(h, 0.0)
    h = jnp.dot(h, w2_ref[...], preferred_element_type=jnp.float32) + b2_ref[...]
    h = jnp.maximum(h, 0.0)
    y = jnp.dot(h, w3_ref[...], preferred_element_type=jnp.float32) + b3_ref[...]
    # Thanks to the block-diagonal weight fold, y already has the final
    # (rows, window_width * out_dim) layout: store is a full-width (lane-dense) vst.
    o_ref[...] = y.astype(o_ref.dtype)


@functools.lru_cache(maxsize=1)
def _num_tensorcores():
    """Best-effort TensorCore count per chip (2 on v7x / v5p / v4 megacore, else 1)."""
    try:
        kind = (getattr(jax.devices()[0], "device_kind", "") or "").lower()
        if ("v7" in kind) or ("v5p" in kind) or ("v4" in kind):
            return 2
    except Exception:
        pass
    return 1


def _lane_pad(n):
    return pl.cdiv(n, 128) * 128


def _vmem_bytes(tile_r, fold_in, fold_h1, fold_h2, fold_out, in_bytes, out_bytes):
    """Rough VMEM working-set estimate for one grid step (lane-padded, double-buffered)."""
    x_bufs = 2 * tile_r * _lane_pad(fold_in) * in_bytes          # double-buffered input
    o_bufs = 2 * tile_r * _lane_pad(fold_out) * out_bytes        # double-buffered output
    temps = tile_r * (_lane_pad(fold_h1) + _lane_pad(fold_h2) + _lane_pad(fold_out)) * 4
    weights = 2 * 4 * (fold_in * _lane_pad(fold_h1)
                       + fold_h1 * _lane_pad(fold_h2)
                       + fold_h2 * _lane_pad(fold_out)
                       + 3 * _lane_pad(fold_out))
    return x_bufs + o_bufs + temps + weights


def _pick_tile_rows(m_rows, target_rows, num_cores,
                    fold_in, fold_h1, fold_h2, fold_out, in_bytes, out_bytes):
    """Folded-row tile size.

    Multiple of 8 (or equal to the full extent), large enough to amortize the
    ~0.35us per-grid-step overhead, shrunk to fit the VMEM budget, and kept at
    grid >= 2 on 2-TensorCore chips so the "parallel" axis shards across cores.
    No exact-divisor requirement: the ragged edge block is masked by Pallas.
    """
    target_rows = max(8, (target_rows // 8) * 8)
    if m_rows <= target_rows:
        if num_cores >= 2 and m_rows >= 16:
            tile = ((pl.cdiv(m_rows, 2) + 7) // 8) * 8   # grid == 2 -> both TCs busy
        else:
            tile = m_rows                                 # single full-extent block
    else:
        tile = target_rows
    # Shrink until the working set fits the VMEM budget (keeps v7x's 64 MiB happy).
    while tile > 64 and _vmem_bytes(tile, fold_in, fold_h1, fold_h2, fold_out,
                                    in_bytes, out_bytes) > _VMEM_BUDGET_BYTES:
        tile = max(64, ((tile // 2) // 8) * 8)
    return tile


@functools.partial(jax.jit, static_argnames=("window_width", "target_tile_rows"))
def path_encoder_mlp(x2d, w1, b1, w2, b2, w3, b3, *, window_width, target_tile_rows=4096):
    """x2d: (M, num_paths) -> (M // window_width, window_width * out_dim) via Pallas.

    Implements relu_last=False, layer_norm=False with exactly two hidden layers.
    Weights are (in_features, out_features); transpose PyTorch (out, in) weights.
    """
    M, num_paths = x2d.shape
    h1 = w1.shape[1]
    h2 = w2.shape[1]
    out_dim = w3.shape[1]
    ww = window_width
    assert M % ww == 0, "rows must be a multiple of window_width"

    # --- Fold window_width into the feature axis (pure row-major view). ---
    m_rows = M // ww
    fold_in, fold_h1, fold_h2, fold_out = ww * num_paths, ww * h1, ww * h2, ww * out_dim
    x_fold = x2d.reshape(m_rows, fold_in)

    # Block-diagonal weights / tiled biases (a few KiB; built per call, negligible).
    eye = jnp.eye(ww, dtype=w1.dtype)
    w1f = jnp.kron(eye, w1)
    w2f = jnp.kron(eye, w2)
    w3f = jnp.kron(eye, w3)
    b1f = jnp.tile(b1, (1, ww))
    b2f = jnp.tile(b2, (1, ww))
    b3f = jnp.tile(b3, (1, ww))

    # TODO(synk): allow bf16 output dtype to cut HBM store traffic ~40% when the
    # downstream consumer tolerates it; kept f32 here to match module semantics.
    out_dtype = x2d.dtype

    tile_r = _pick_tile_rows(
        m_rows, target_tile_rows, _num_tensorcores(),
        fold_in, fold_h1, fold_h2, fold_out,
        x2d.dtype.itemsize, jnp.dtype(out_dtype).itemsize)
    grid = (pl.cdiv(m_rows, tile_r),)

    flops = 2 * m_rows * (fold_in * fold_h1 + fold_h1 * fold_h2 + fold_h2 * fold_out)
    bytes_accessed = (m_rows * fold_in * x2d.dtype.itemsize
                      + m_rows * fold_out * jnp.dtype(out_dtype).itemsize
                      + (w1f.size + w2f.size + w3f.size
                         + b1f.size + b2f.size + b3f.size) * w1.dtype.itemsize)

    out = pl.pallas_call(
        _mlp_kernel,
        out_shape=jax.ShapeDtypeStruct((m_rows, fold_out), out_dtype),
        grid_spec=pltpu.PrefetchScalarGridSpec(
            num_scalar_prefetch=0,
            grid=grid,
            in_specs=[
                # Activations: streamed by row tile; ragged edge block is masked.
                pl.BlockSpec((tile_r, fold_in), lambda i: (i, 0)),
                # Weights / biases: constant index maps -> VMEM resident every step.
                pl.BlockSpec((fold_in, fold_h1), lambda i: (0, 0)),
                pl.BlockSpec((1, fold_h1), lambda i: (0, 0)),
                pl.BlockSpec((fold_h1, fold_h2), lambda i: (0, 0)),
                pl.BlockSpec((1, fold_h2), lambda i: (0, 0)),
                pl.BlockSpec((fold_h2, fold_out), lambda i: (0, 0)),
                pl.BlockSpec((1, fold_out), lambda i: (0, 0)),
            ],
            # Lane-dense output: width = window_width * out_dim (128 for defaults).
            out_specs=pl.BlockSpec((tile_r, fold_out), lambda i: (i, 0)),
        ),
        compiler_params=pltpu.CompilerParams(
            dimension_semantics=("parallel",),
            vmem_limit_bytes=_VMEM_LIMIT_BYTES,
        ),
        cost_estimate=pl.CostEstimate(
            flops=flops, transcendentals=0, bytes_accessed=bytes_accessed),
    )(x_fold, w1f, b1f, w2f, b2f, w3f, b3f)

    return out


def path_encoder_forward(actions, params, *, num_paths, window_width, out_dimension,
                         target_tile_rows=4096):
    """Full PathEncoder.forward (relu_last=False, layer_norm=False).

    The kernel already emits the final (batch, window_width * out_dim) layout.
    """
    del out_dimension  # implied by w3.shape[1]
    assert len(params) == 6, "kernel is specialized to exactly two hidden layers"
    w1, b1, w2, b2, w3, b3 = params
    x2d = actions.reshape(-1, num_paths)
    return path_encoder_mlp(x2d, w1, b1, w2, b2, w3, b3,
                            window_width=window_width,
                            target_tile_rows=target_tile_rows)


def init_params(key, num_paths, hidden_sizes, out_dimension, dtype=jnp.float32):
    """Deterministic synthetic weights, shapes matching linear_sequential.

    NOTE: stored as (in_features, out_features); transpose real PyTorch
    nn.Linear checkpoints ((out, in)) when loading, and reshape biases to (1, out).
    """
    sizes = [num_paths] + list(hidden_sizes) + [out_dimension]
    params = []
    for i in range(len(sizes) - 1):
        key, k_w, k_b = jax.random.split(key, 3)
        fan_in = sizes[i]
        w = jax.random.normal(k_w, (sizes[i], sizes[i + 1]), dtype) * (1.0 / jnp.sqrt(fan_in))
        b = jax.random.normal(k_b, (1, sizes[i + 1]), dtype) * 0.01
        params += [w, b]
    return tuple(params)


def _reference_forward(actions, params, *, num_paths, window_width, out_dimension):
    """Pure-JAX reference of the same forward for correctness checks."""
    w1, b1, w2, b2, w3, b3 = params
    x = actions.reshape(-1, num_paths)
    h = jnp.maximum(x @ w1 + b1, 0.0)
    h = jnp.maximum(h @ w2 + b2, 0.0)
    y = h @ w3 + b3
    return y.reshape(-1, window_width * out_dimension)


if __name__ == "__main__":
    window_width = 4
    num_paths = 8
    hidden_sizes = [32, 32]
    out_dimension = 32

    key = jax.random.PRNGKey(0)
    key, k_params = jax.random.split(key)
    params = init_params(k_params, num_paths, hidden_sizes, out_dimension)

    # Case 1: tiny shape consistent with the module (batch=2) -> single full-extent block.
    key, k_x = jax.random.split(key)
    actions_small = jax.random.normal(k_x, (2, window_width, num_paths), jnp.float32)
    out_small = path_encoder_forward(
        actions_small, params,
        num_paths=num_paths, window_width=window_width, out_dimension=out_dimension)
    out_small = jax.block_until_ready(out_small)
    ref_small = _reference_forward(
        actions_small, params,
        num_paths=num_paths, window_width=window_width, out_dimension=out_dimension)
    assert out_small.shape == (2, window_width * out_dimension), out_small.shape
    assert jnp.allclose(out_small, ref_small, atol=1e-5, rtol=1e-5), "small case mismatch"

    # Case 2: batch=100 with a deliberately small tile target -> multi-step grid
    # (4 steps of 32 folded rows) with a masked ragged edge block (100 = 3*32 + 4),
    # exercising the lane-dense tiled path with no padding copies.
    key, k_x2 = jax.random.split(key)
    actions_mid = jax.random.normal(k_x2, (100, window_width, num_paths), jnp.float32)
    out_mid = path_encoder_forward(
        actions_mid, params,
        num_paths=num_paths, window_width=window_width, out_dimension=out_dimension,
        target_tile_rows=32)
    out_mid = jax.block_until_ready(out_mid)
    ref_mid = _reference_forward(
        actions_mid, params,
        num_paths=num_paths, window_width=window_width, out_dimension=out_dimension)
    assert out_mid.shape == (100, window_width * out_dimension), out_mid.shape
    assert jnp.allclose(out_mid, ref_mid, atol=1e-5, rtol=1e-5), "tiled case mismatch"

    print("KERNEL_OK")
</pallas_src>

<mosaic_0001>
module attributes {stable_mosaic.version = 11 : i64} {
  func.func @_mlp_kernel(%arg0: i32, %arg1: memref<2x32xf32, #tpu.memory_space<vmem>>, %arg2: memref<32x128xf32, #tpu.memory_space<vmem>>, %arg3: memref<1x128xf32, #tpu.memory_space<vmem>>, %arg4: memref<128x128xf32, #tpu.memory_space<vmem>>, %arg5: memref<1x128xf32, #tpu.memory_space<vmem>>, %arg6: memref<128x128xf32, #tpu.memory_space<vmem>>, %arg7: memref<1x128xf32, #tpu.memory_space<vmem>>, %arg8: memref<2x128xf32, #tpu.memory_space<vmem>>) attributes {dimension_semantics = [#tpu.dimension_semantics<parallel>], iteration_bounds = array<i64: 1>, scalar_prefetch = 0 : i64, scratch_operands = 0 : i64, tpu.core_type = #tpu.core_type<tc>, window_params = [{transform_indices = @transform_0, window_bounds = array<i64: 2, 32>}, {pipeline_mode = #tpu.pipeline_mode<synchronous>, transform_indices = @transform_1, window_bounds = array<i64: 32, 128>}, {pipeline_mode = #tpu.pipeline_mode<synchronous>, transform_indices = @transform_2, window_bounds = array<i64: 1, 128>}, {pipeline_mode = #tpu.pipeline_mode<synchronous>, transform_indices = @transform_3, window_bounds = array<i64: 128, 128>}, {pipeline_mode = #tpu.pipeline_mode<synchronous>, transform_indices = @transform_4, window_bounds = array<i64: 1, 128>}, {pipeline_mode = #tpu.pipeline_mode<synchronous>, transform_indices = @transform_5, window_bounds = array<i64: 128, 128>}, {pipeline_mode = #tpu.pipeline_mode<synchronous>, transform_indices = @transform_6, window_bounds = array<i64: 1, 128>}, {transform_indices = @transform_7, window_bounds = array<i64: 2, 128>}]} {
    %c0 = arith.constant 0 : index
    %c0_0 = arith.constant 0 : index
    %0 = vector.load %arg1[%c0, %c0_0] : memref<2x32xf32, #tpu.memory_space<vmem>>, vector<2x32xf32>
    %c0_1 = arith.constant 0 : index
    %c0_2 = arith.constant 0 : index
    %1 = vector.load %arg2[%c0_1, %c0_2] : memref<32x128xf32, #tpu.memory_space<vmem>>, vector<32x128xf32>
    %cst = arith.constant dense<0.000000e+00> : vector<2x128xf32>
    %2 = tpu.matmul %0, %1, %cst {dimension_numbers = #tpu.dot_dimension_numbers<[1], [0], [0], [1], [0, 0, 1, 1], [], []>} : vector<2x32xf32>, vector<32x128xf32>, vector<2x128xf32> -> vector<2x128xf32>
    %c0_3 = arith.constant 0 : index
    %c0_4 = arith.constant 0 : index
    %3 = vector.load %arg3[%c0_3, %c0_4] : memref<1x128xf32, #tpu.memory_space<vmem>>, vector<1x128xf32>
    %4 = vector.broadcast %3 : vector<1x128xf32> to vector<2x128xf32>
    %5 = arith.addf %2, %4 : vector<2x128xf32>
    %cst_5 = arith.constant 0.000000e+00 : f32
    %6 = vector.broadcast %cst_5 : f32 to vector<2x128xf32>
    %7 = arith.maximumf %5, %6 : vector<2x128xf32>
    %c0_6 = arith.constant 0 : index
    %c0_7 = arith.constant 0 : index
    %8 = vector.load %arg4[%c0_6, %c0_7] : memref<128x128xf32, #tpu.memory_space<vmem>>, vector<128x128xf32>
    %cst_8 = arith.constant dense<0.000000e+00> : vector<2x128xf32>
    %9 = tpu.matmul %7, %8, %cst_8 {dimension_numbers = #tpu.dot_dimension_numbers<[1], [0], [0], [1], [0, 0, 1, 1], [], []>} : vector<2x128xf32>, vector<128x128xf32>, vector<2x128xf32> -> vector<2x128xf32>
    %c0_9 = arith.constant 0 : index
    %c0_10 = arith.constant 0 : index
    %10 = vector.load %arg5[%c0_9, %c0_10] : memref<1x128xf32, #tpu.memory_space<vmem>>, vector<1x128xf32>
    %11 = vector.broadcast %10 : vector<1x128xf32> to vector<2x128xf32>
    %12 = arith.addf %9, %11 : vector<2x128xf32>
    %cst_11 = arith.constant 0.000000e+00 : f32
    %13 = vector.broadcast %cst_11 : f32 to vector<2x128xf32>
    %14 = arith.maximumf %12, %13 : vector<2x128xf32>
    %c0_12 = arith.constant 0 : index
    %c0_13 = arith.constant 0 : index
    %15 = vector.load %arg6[%c0_12, %c0_13] : memref<128x128xf32, #tpu.memory_space<vmem>>, vector<128x128xf32>
    %cst_14 = arith.constant dense<0.000000e+00> : vector<2x128xf32>
    %16 = tpu.matmul %14, %15, %cst_14 {dimension_numbers = #tpu.dot_dimension_numbers<[1], [0], [0], [1], [0, 0, 1, 1], [], []>} : vector<2x128xf32>, vector<128x128xf32>, vector<2x128xf32> -> vector<2x128xf32>
    %c0_15 = arith.constant 0 : index
    %c0_16 = arith.constant 0 : index
    %17 = vector.load %arg7[%c0_15, %c0_16] : memref<1x128xf32, #tpu.memory_space<vmem>>, vector<1x128xf32>
    %18 = vector.broadcast %17 : vector<1x128xf32> to vector<2x128xf32>
    %19 = arith.addf %16, %18 : vector<2x128xf32>
    %c0_17 = arith.constant 0 : index
    %c0_18 = arith.constant 0 : index
    %20 = vector.load %arg8[%c0_17, %c0_18] : memref<2x128xf32, #tpu.memory_space<vmem>>, vector<2x128xf32>
    tpu.vector_store %arg8[%c0_17, %c0_18], %19 {strides = array<i32>} : memref<2x128xf32, #tpu.memory_space<vmem>>, vector<2x128xf32>,
    return
  }
  func.func @transform_0(%arg0: i32) -> (i32, i32) {
    %c0_i32 = arith.constant 0 : i32
    %c0_i32_0 = arith.constant 0 : i32
    return %arg0, %c0_i32 : i32, i32
  }
  func.func @transform_1(%arg0: i32) -> (i32, i32) {
    %c0_i32 = arith.constant 0 : i32
    %c0_i32_0 = arith.constant 0 : i32
    %c0_i32_1 = arith.constant 0 : i32
    return %c0_i32, %c0_i32_0 : i32, i32
  }
  func.func @transform_2(%arg0: i32) -> (i32, i32) {
    %c0_i32 = arith.constant 0 : i32
    %c0_i32_0 = arith.constant 0 : i32
    %c0_i32_1 = arith.constant 0 : i32
    return %c0_i32, %c0_i32_0 : i32, i32
  }
  func.func @transform_3(%arg0: i32) -> (i32, i32) {
    %c0_i32 = arith.constant 0 : i32
    %c0_i32_0 = arith.constant 0 : i32
    %c0_i32_1 = arith.constant 0 : i32
    return %c0_i32, %c0_i32_0 : i32, i32
  }
  func.func @transform_4(%arg0: i32) -> (i32, i32) {
    %c0_i32 = arith.constant 0 : i32
    %c0_i32_0 = arith.constant 0 : i32
    %c0_i32_1 = arith.constant 0 : i32
    return %c0_i32, %c0_i32_0 : i32, i32
  }
  func.func @transform_5(%arg0: i32) -> (i32, i32) {
    %c0_i32 = arith.constant 0 : i32
    %c0_i32_0 = arith.constant 0 : i32
    %c0_i32_1 = arith.constant 0 : i32
    return %c0_i32, %c0_i32_0 : i32, i32
  }
  func.func @transform_6(%arg0: i32) -> (i32, i32) {
    %c0_i32 = arith.constant 0 : i32
    %c0_i32_0 = arith.constant 0 : i32
    %c0_i32_1 = arith.constant 0 : i32
    return %c0_i32, %c0_i32_0 : i32, i32
  }
  func.func @transform_7(%arg0: i32) -> (i32, i32) {
    %c0_i32 = arith.constant 0 : i32
    %c0_i32_0 = arith.constant 0 : i32
    return %arg0, %c0_i32 : i32, i32
  }
}

</mosaic_0001>

<bundles_post_ra>
// kernel: path_encoder_mlp.1
= control target key start
LH: loop header
LB: loop body
LE: loop exit
PB: predicated region body
PF: predicated region fallthrough
CT: control target
= control target key end

     0   :  { %v522_v3 = vmov 0.0|0.0   ;;  %vm523_vm0 = vmmov 0   ;;  %v524_v6 = vmov 0.0   ;;  %s719_s0 = inlined_call_operand.vmem [shape: f32[2,32], index: 0, kind: input, shape index: {}]   ;;  %s720_s1 = inlined_call_operand.vmem [shape: f32[32,128], index: 1, kind: input, shape index: {}]   ;;  %s721_s2 = inlined_call_operand.vmem [shape: f32[1,128], index: 2, kind: input, shape index: {}]   ;;  %s722_s3 = inlined_call_operand.vmem [shape: f32[128,128], index: 3, kind: input, shape index: {}]   ;;  %s723_s4 = inlined_call_operand.vmem [shape: f32[1,128], index: 4, kind: input, shape index: {}]   ;;  %s724_s5 = inlined_call_operand.vmem [shape: f32[128,128], index: 5, kind: input, shape index: {}]   ;;  %s725_s6 = inlined_call_operand.vmem [shape: f32[1,128], index: 6, kind: input, shape index: {}]   ;;  %s726_s7 = inlined_call_operand.hbm [shape: f32[2,128], index: 7, kind: output, shape index: {}]  }
   0x1   :  { %v28_v0 = vld [vmem:[%s720_s1] sm:$0xff]  ;;  %v29_v1 = vld [vmem:[%s720_s1 + $0x8] sm:$0xff]  ;;  %v30_v2 = vld [vmem:[%s720_s1 + $0x10] sm:$0xff]  ;;  %440 = vmatprep.subr.bf16.mxu0 %v522_v3  ;;  %367 = vmatprep.mubr.msk.f32.mxu0 %vm523_vm0, %v524_v6 }
   0x2   :  { %v441_v4 = vpack.c.bf16 %v29_v1, %v28_v0  ;;  %v31_v5 = vld [vmem:[%s720_s1 + $0x18] sm:$0xff]  ;;  %v114_v7 = vld [vmem:[%s722_s3] sm:$0xff]  ;;  %446 = vmatprep.subr.bf16.mxu1 %v522_v3  ;;  %v115_v8 = vld [vmem:[%s722_s3 + $0x8] sm:$0xff]  ;;  %402 = vmatprep.mubr.msk.f32.mxu1 %vm523_vm0, %v524_v6 }
   0x3   :  { %v116_v9 = vld [vmem:[%s722_s3 + $0x10] sm:$0xff]  ;;  %v117_v10 = vld [vmem:[%s722_s3 + $0x18] sm:$0xff]  ;;  %v444_v11 = vpack.c.bf16 %v31_v5, %v30_v2  ;;  %v447_v12 = vpack.c.bf16 %v115_v8, %v114_v7  ;;  %v118_v14 = vld [vmem:[%s722_s3 + $0x20] sm:$0xff] }
   0x4   :  { %442 = vmatpush3.bf16.msra.mxu0 %v441_v4  ;;  %v450_v13 = vpack.c.bf16 %v117_v10, %v116_v9  ;;  %v119_v15 = vld [vmem:[%s722_s3 + $0x28] sm:$0xff] }
   0x5   :  { %443 = vmatprep.subr.bf16.mxu0 %v522_v3  ;;  %448 = vmatpush3.bf16.msra.mxu1 %v447_v12 }
   0x6   :  { %449 = vmatprep.subr.bf16.mxu1 %v522_v3 }
   0x7   :  { %12 = vsyncpa [#allocation3], 0  ;;  %v27_v16 = vld [vmem:[%s719_s0] sm:$0x3]  ;;  %vm39_vm1 = vcmask 261120   ;;  %v453_v17 = vpack.c.bf16 %v119_v15, %v118_v14  ;;  %v120_v18 = vld [vmem:[%s722_s3 + $0x30] sm:$0xff] }
   0x8   :  { %445 = vmatpush3.bf16.msra.mxu0 %v444_v11  ;;  %v121_v19 = vld [vmem:[%s722_s3 + $0x38] sm:$0xff]  ;;  %v122_v21 = vld [vmem:[%s722_s3 + $0x40] sm:$0xff]  ;;  %v123_v22 = vld [vmem:[%s722_s3 + $0x48] sm:$0xff]  ;;  %s525_s26 = smov [#allocation2]  }
   0x9   :  { %470 = vmatprep.subr.bf16.mxu0 %v522_v3  ;;  %451 = vmatpush3.bf16.msra.mxu1 %v450_v13  ;;  %v456_v20 = vpack.c.bf16 %v121_v19, %v120_v18  ;;  %v459_v23 = vpack.c.bf16 %v123_v22, %v122_v21  ;;  %v124_v24 = vld [vmem:[%s722_s3 + $0x50] sm:$0xff]  ;;  %v125_v25 = vld [vmem:[%s722_s3 + $0x58] sm:$0xff]  ;;  %v126_v27 = vld [vmem:[%s722_s3 + $0x60] sm:$0xff]  ;;  %s308_s27 = sshll.u32 %s525_s26, 4  ;;  %s309_s27 = int_to_ptr.vmem [resolvable:$true] %s308_s27 }
   0xa   :  { %452 = vmatprep.subr.bf16.mxu1 %v522_v3  ;;  %v462_v26 = vpack.c.bf16 %v125_v25, %v124_v24  ;;  %v127_v28 = vld [vmem:[%s722_s3 + $0x68] sm:$0xff]  ;;  %v128_v30 = vld [vmem:[%s722_s3 + $0x70] sm:$0xff]  ;;  %v129_v31 = vld [vmem:[%s722_s3 + $0x78] sm:$0xff]  ;;  %p503_p1 = scmp.lt.s32.totalorder %s309_s27, %s309_s27 }
   0xb   :  { %368 = vmatmul.mubr.msk.f32.vlgmr.msra.gmra.mrb[0].mxu0 %vm39_vm1, %v27_v16  ;;  %v465_v29 = vpack.c.bf16 %v127_v28, %v126_v27  ;;  %v468_v32 = vpack.c.bf16 %v129_v31, %v128_v30  ;;  %v208_v33 = vld [vmem:[%s724_s5] sm:$0xff]  ;;  %v209_v34 = vld [vmem:[%s724_s5 + $0x8] sm:$0xff]  ;;  %v210_v35 = vld [vmem:[%s724_s5 + $0x10] sm:$0xff] }
   0xc   :  { %437 = vmatprep.mubr.msk.f32.mxu0 %vm523_vm0, %v524_v6  ;;  %v471_v36 = vpack.c.bf16 %v209_v34, %v208_v33  ;;  %v211_v37 = vld [vmem:[%s724_s5 + $0x18] sm:$0xff]  ;;  %v212_v39 = vld [vmem:[%s724_s5 + $0x20] sm:$0xff]  ;;  %v213_v40 = vld [vmem:[%s724_s5 + $0x28] sm:$0xff] }
   0xd   :  { %454 = vmatpush3.bf16.msra.mxu1 %v453_v17  ;;  %v474_v38 = vpack.c.bf16 %v211_v37, %v210_v35  ;;  %v477_v41 = vpack.c.bf16 %v213_v40, %v212_v39  ;;  %v214_v42 = vld [vmem:[%s724_s5 + $0x30] sm:$0xff]  ;;  %v215_v43 = vld [vmem:[%s724_s5 + $0x38] sm:$0xff]  ;;  %v216_v45 = vld [vmem:[%s724_s5 + $0x40] sm:$0xff] }
   0xe   :  { %455 = vmatprep.subr.bf16.mxu1 %v522_v3  ;;  %472 = vmatpush3.bf16.msra.mxu0 %v471_v36  ;;  %v480_v44 = vpack.c.bf16 %v215_v43, %v214_v42  ;;  %v217_v46 = vld [vmem:[%s724_s5 + $0x48] sm:$0xff]  ;;  %v218_v48 = vld [vmem:[%s724_s5 + $0x50] sm:$0xff]  ;;  %v219_v49 = vld [vmem:[%s724_s5 + $0x58] sm:$0xff] }
   0xf   :  { %473 = vmatprep.subr.bf16.mxu0 %v522_v3  ;;  %v483_v47 = vpack.c.bf16 %v217_v46, %v216_v45  ;;  %v486_v50 = vpack.c.bf16 %v219_v49, %v218_v48  ;;  %v220_v51 = vld [vmem:[%s724_s5 + $0x60] sm:$0xff]  ;;  %v221_v52 = vld [vmem:[%s724_s5 + $0x68] sm:$0xff]  ;;  %v222_v59 = vld [vmem:[%s724_s5 + $0x70] sm:$0xff] }
  0x10   :  { %v489_v53 = vpack.c.bf16 %v221_v52, %v220_v51  ;;  %v316_v54 = vld [vmem:[%s721_s2] ss:$0 sm:$0xff]  ;;  %v223_v60 = vld [vmem:[%s724_s5 + $0x78] sm:$0xff]  ;;  %s498_s5 = scalar_lea.vmem %s309_s27, 32 }
  0x11   :  { %457 = vmatpush3.bf16.msra.mxu1 %v456_v20  ;;  %v492_v61 = vpack.c.bf16 %v223_v60, %v222_v59  ;;  %v318_v62 = vld [vmem:[%s723_s4] ss:$0 sm:$0xff]  ;;  %p499_p0 = scmp.ne.s32.totalorder %s309_s27, %s498_s5  ;;  %p504_p2 = scmp.lt.s32.totalorder %s498_s5, %s498_s5 }
  0x12   :  { %458 = vmatprep.subr.bf16.mxu1 %v522_v3  ;;  %475 = vmatpush3.bf16.msra.mxu0 %v474_v38 }
  0x13   :  { %476 = vmatprep.subr.bf16.mxu0 %v522_v3  ;;  %p505_p3 = por %p504_p2, %p503_p1 }
  0x15   :  { %460 = vmatpush3.bf16.msra.mxu1 %v459_v23  ;;  %p506_p4 = pnand %p505_p3, %p499_p0 }
  0x16   :  { %461 = vmatprep.subr.bf16.mxu1 %v522_v3  ;;  %478 = vmatpush3.bf16.msra.mxu0 %v477_v41 }
  0x17   :  { %479 = vmatprep.subr.bf16.mxu0 %v522_v3 }
  0x19   :  { %463 = vmatpush3.bf16.msra.mxu1 %v462_v26 }
  0x1a   :  { %464 = vmatprep.subr.bf16.mxu1 %v522_v3  ;;  %481 = vmatpush3.bf16.msra.mxu0 %v480_v44 }
  0x1b   :  { %482 = vmatprep.subr.bf16.mxu0 %v522_v3 }
  0x1d   :  { %466 = vmatpush3.bf16.msra.mxu1 %v465_v29 }
  0x1e   :  { %467 = vmatprep.subr.bf16.mxu1 %v522_v3  ;;  %484 = vmatpush3.bf16.msra.mxu0 %v483_v47 }
  0x1f   :  { %485 = vmatprep.subr.bf16.mxu0 %v522_v3 }
  0x21   :  { %469 = vmatpush3.bf16.msra.mxu1 %v468_v32 }
  0x22   :  { %487 = vmatpush3.bf16.msra.mxu0 %v486_v50 }
  0x23   :  { %488 = vmatprep.subr.bf16.mxu0 %v522_v3 }
  0x26   :  { %490 = vmatpush3.bf16.msra.mxu0 %v489_v53 }
  0x27   :  { %491 = vmatprep.subr.bf16.mxu0 %v522_v3  ;;  %v319_v3 = vld [vmem:[%s725_s6] ss:$0 sm:$0xff] }
  0x2a   :  { %493 = vmatpush3.bf16.msra.mxu0 %v492_v61 }
  0xde   :  { %v109_v55 = vpop.f32.mrb[0].mxu0 }
  0xdf   :  { %v110_v56 = vadd.f32 %v316_v54, %v109_v55  ;;  %v369_v57 = vpop.f32.mrb[1].mxu0 }
  0xe1   :  { %v113_v58 = vmax.f32 %v110_v56, 0.0 }
  0xe3   :  { %403 = vmatmul.mubr.f32.vlgmr.msra.gmra.mrb[0].mxu1 %v113_v58 }
 0x1b6   :  { %v203_v63 = vpop.f32.mrb[0].mxu1 }
 0x1b7   :  { %v204_v0 = vadd.f32 %v318_v62, %v203_v63  ;;  %v404_v1 = vpop.f32.mrb[1].mxu1 }
 0x1b9   :  { %v207_v2 = vmax.f32 %v204_v0, 0.0 }
 0x1bb   :  { %438 = vmatmul.mubr.f32.vlgmr.msra.gmra.mrb[2].mxu0 %v207_v2 }
 0x28e   :  { %v297_v4 = vpop.f32.mrb[2].mxu0 }
 0x28f   :  { %v298_v5 = vadd.f32 %v319_v3, %v297_v4  ;;  %v439_v6 = vpop.f32.mrb[3].mxu0 }
 0x291   :  { %301 = vst [vmem:[#allocation2] sm:$0x3] %v298_v5 }
 0x292   :  { %509 = shalt.err (!%p506_p4)
}
 0x293   :  { %s510_s29 = scalar_lea.hbm %s726_s7, 32 }
 0x294   :  { %p511_p5 = scmp.ne.s32.totalorder %s726_s7, %s510_s29  ;;  %p514_p6 = scmp.lt.u32.totalorder %s510_s29, %s726_s7 }
 0x296   :  { %p516_p7 = pnand %p514_p6, %p511_p5 }
 0x298   :  { %519 = shalt.err (!%p516_p7)
}
 0x299   :  { %311 = dma.vmem_to_hbm [thread:$0]  %s309_s27, 32, %s726_s7, [#allocation3]  }
 0x29a   :  { %520 = dma.done.wait [#allocation3], 32  }
 0x29b   :  { %521 = vsyncadd [#allocation3], 4294967264 }
 0x29c   :  { %315 = vsyncpa [#allocation3], 1 }

</bundles_post_ra>
